<compile_context>
chip_gen: v7x
topology: tpu7x:2x2x1
jax: 0.10.0
libtpu: 0.0.40
codegen_flags: <defaults>
</compile_context>

<pallas_src>
import math
from functools import partial

import jax
import jax.numpy as jnp
from jax.experimental import pallas as pl
from jax.experimental.pallas import tpu as pltpu


# ----------------------------- helpers ---------------------------------------

_BUF1 = pl.Buffered(1)   # single-buffer blocks whose index_map is constant over the grid


def _row_tile(m):
    """Row tile for row-independent kernels (cdiv grid, tail rows masked on store)."""
    return m if m <= 512 else 512


def _col_tile(n):
    """Lane-dense column tile for the generator head (streams vocab tiles)."""
    return n if n <= 1024 else 1024


def _seq_tile(s):
    """Query-row tile for attention: largest multiple-of-8 divisor of s, capped at 256."""
    for t in (256, 128, 64, 32, 16, 8):
        if t <= s and s % t == 0:
            return t
    return s


def _mosaic_params(sem, blocks):
    """CompilerParams with vmem_limit_bytes derived from the actual VMEM block sizes.

    blocks: iterable of (block_shape, dtype, n_buffers).  2x + 8 MiB headroom covers
    in-kernel intermediates; clamped to [32 MiB, 100 MiB]."""
    need = sum(math.prod(s) * jnp.dtype(d).itemsize * nb for s, d, nb in blocks)
    limit = int(min(100 * 2 ** 20, max(32 * 2 ** 20, 2 * need + (8 << 20))))
    return pltpu.CompilerParams(dimension_semantics=sem, vmem_limit_bytes=limit)


def _layernorm(y, g, b, eps):
    mean = jnp.mean(y, axis=-1, keepdims=True)
    c = y - mean
    var = jnp.mean(c * c, axis=-1, keepdims=True)
    return c * jax.lax.rsqrt(var + eps) * g + b


# ----------------------------- fused attention block -------------------------

def _mha_kernel(*refs, n_heads, scale, eps, has_mask, is_self, tq):
    if is_self:
        x_ref = refs[0]
        rest = refs[1:]
    else:
        xq_ref, xkv_ref = refs[0], refs[1]
        rest = refs[2:]
    wq_ref, bq_ref, wkv_ref, bkv_ref, wo_ref, bo_ref, g_ref, bln_ref = rest[:8]
    m_ref = rest[8] if has_mask else None
    o_ref = refs[-1]

    if is_self:
        x_kv = x_ref[0]                                             # (Sk, H) f32
        q_start = pl.multiple_of(pl.program_id(1) * tq, tq)
        x_q = x_ref[0, pl.ds(q_start, tq), :]                       # (tq, H), no second DMA
    else:
        x_q = xq_ref[0]                                             # (tq, H)
        x_kv = xkv_ref[0]                                           # (Sk, H)

    H = x_q.shape[-1]
    Dh = H // n_heads
    Sk = x_kv.shape[0]

    # Fused projections: bf16 MXU operands, f32 accumulation.
    q = jnp.dot(x_q.astype(jnp.bfloat16), wq_ref[...],
                preferred_element_type=jnp.float32) + bq_ref[...]
    q = q * scale                                                   # hoisted: scale once
    kv = jnp.dot(x_kv.astype(jnp.bfloat16), wkv_ref[...],
                 preferred_element_type=jnp.float32) + bkv_ref[...]
    k = kv[:, :H]
    v = kv[:, H:]

    # Head-major (n_heads, S, Dh) layouts; ALL heads in one batched dot_general.
    qh = jnp.transpose(q.reshape(tq, n_heads, Dh), (1, 0, 2)).astype(jnp.bfloat16)
    kh = jnp.transpose(k.reshape(Sk, n_heads, Dh), (1, 0, 2)).astype(jnp.bfloat16)
    vh = jnp.transpose(v.reshape(Sk, n_heads, Dh), (1, 0, 2)).astype(jnp.bfloat16)

    s = jax.lax.dot_general(qh, kh, (((2,), (2,)), ((0,), (0,))),
                            preferred_element_type=jnp.float32)     # (n, tq, Sk)
    if m_ref is not None:
        s = s + m_ref[0]                                            # one add, broadcasts over heads
    s = s - jnp.max(s, axis=-1, keepdims=True)                      # exact f32 softmax
    e = jnp.exp(s)
    p_attn = e / jnp.sum(e, axis=-1, keepdims=True)

    ctx = jax.lax.dot_general(p_attn.astype(jnp.bfloat16), vh,
                              (((2,), (1,)), ((0,), (0,))),
                              preferred_element_type=jnp.float32)   # (n, tq, Dh)

    # Output projection head-wise (wo is (n, Dh, H)); sum over heads == concat @ Wo.
    yh = jax.lax.dot_general(ctx.astype(jnp.bfloat16), wo_ref[...],
                             (((2,), (1,)), ((0,), (0,))),
                             preferred_element_type=jnp.float32)    # (n, tq, H)
    y = jnp.sum(yh, axis=0) + bo_ref[...] + x_q                     # residual (dropout = id)
    o_ref[0] = _layernorm(y, g_ref[...], bln_ref[...], eps)


def mha_block(x_q, x_kv, p, gamma, beta, eps, n_heads, mask=None, is_self=False):
    """Fused QKV-proj + MHA + out-proj + residual + LayerNorm.
    x_q: (B, Sq, H); x_kv: (B, Sk, H) (ignored when is_self=True).
    mask: None, (B, 1, Sk) padding bias, or (1, Sq, Sk) shared (causal) bias."""
    B, Sq, H = x_q.shape
    Sk = Sq if is_self else x_kv.shape[1]
    Dh = H // n_heads
    scale = 1.0 / math.sqrt(Dh)
    tq = _seq_tile(Sq)
    n_q = Sq // tq
    has_mask = mask is not None

    if is_self:
        in_specs = [pl.BlockSpec((1, Sq, H), lambda b, i: (b, 0, 0))]
        args = [x_q]
        blocks = [((1, Sq, H), jnp.float32, 2)]
    else:
        in_specs = [pl.BlockSpec((1, tq, H), lambda b, i: (b, i, 0)),
                    pl.BlockSpec((1, Sk, H), lambda b, i: (b, 0, 0))]
        args = [x_q, x_kv]
        blocks = [((1, tq, H), jnp.float32, 2), ((1, Sk, H), jnp.float32, 2)]

    wo_h = p["wo"].reshape(n_heads, Dh, H)    # head-major out-proj (free reshape outside kernel)
    in_specs += [
        pl.BlockSpec((H, H), lambda b, i: (0, 0), pipeline_mode=_BUF1),
        pl.BlockSpec((1, H), lambda b, i: (0, 0), pipeline_mode=_BUF1),
        pl.BlockSpec((H, 2 * H), lambda b, i: (0, 0), pipeline_mode=_BUF1),
        pl.BlockSpec((1, 2 * H), lambda b, i: (0, 0), pipeline_mode=_BUF1),
        pl.BlockSpec((n_heads, Dh, H), lambda b, i: (0, 0, 0), pipeline_mode=_BUF1),
        pl.BlockSpec((1, H), lambda b, i: (0, 0), pipeline_mode=_BUF1),
        pl.BlockSpec((1, H), lambda b, i: (0, 0), pipeline_mode=_BUF1),
        pl.BlockSpec((1, H), lambda b, i: (0, 0), pipeline_mode=_BUF1),
    ]
    args += [p["wq"], p["bq"].reshape(1, H), p["wkv"], p["bkv"].reshape(1, 2 * H),
             wo_h, p["bo"].reshape(1, H), gamma.reshape(1, H), beta.reshape(1, H)]
    blocks += [((H, H), jnp.bfloat16, 1), ((1, H), jnp.float32, 1),
               ((H, 2 * H), jnp.bfloat16, 1), ((1, 2 * H), jnp.float32, 1),
               ((n_heads, Dh, H), jnp.bfloat16, 1), ((1, H), jnp.float32, 1),
               ((1, H), jnp.float32, 1), ((1, H), jnp.float32, 1)]

    if has_mask:
        mb, mq, mk = mask.shape
        if mb == B and mq == 1:          # per-batch padding bias
            m_rows, m_idx = 1, (lambda b, i: (b, 0, 0))
        elif mq == Sq:                   # shared (causal) bias, row-tiled with the queries
            m_rows, m_idx = tq, (lambda b, i: (0, i, 0))
        else:
            m_rows, m_idx = mq, (lambda b, i: (0, 0, 0))
        in_specs.append(pl.BlockSpec((1, m_rows, mk), m_idx))
        args.append(mask)
        blocks.append(((1, m_rows, mk), jnp.float32, 2))

    blocks.append(((1, tq, H), jnp.float32, 2))                 # output
    blocks.append(((n_heads, tq, Sk), jnp.float32, 2))          # intermediates allowance

    return pl.pallas_call(
        partial(_mha_kernel, n_heads=n_heads, scale=scale, eps=eps,
                has_mask=has_mask, is_self=is_self, tq=tq),
        out_shape=jax.ShapeDtypeStruct((B, Sq, H), jnp.float32),
        grid=(B, n_q),
        in_specs=in_specs,
        out_specs=pl.BlockSpec((1, tq, H), lambda b, i: (b, i, 0)),
        compiler_params=_mosaic_params(("parallel", "parallel"), blocks),
    )(*args)


# ----------------------------- fused FFN block --------------------------------

def _ffn_kernel(x_ref, w1_ref, b1_ref, w2_ref, b2_ref, g_ref, bln_ref, o_ref,
                *, activation, eps):
    x = x_ref[...]                                                   # (tm, H) f32
    h = jnp.dot(x.astype(jnp.bfloat16), w1_ref[...],
                preferred_element_type=jnp.float32) + b1_ref[...]
    if activation == "relu":
        h = jnp.maximum(h, 0.0)
    else:                                 # exact (erf) GELU, as in BERT
        h = 0.5 * h * (1.0 + jax.lax.erf(h * (1.0 / math.sqrt(2.0))))
    y = jnp.dot(h.astype(jnp.bfloat16), w2_ref[...],
                preferred_element_type=jnp.float32) + b2_ref[...]
    y = y + x                                                        # residual
    o_ref[...] = _layernorm(y, g_ref[...], bln_ref[...], eps)


def ffn_block(x, p, gamma, beta, eps, activation):
    """Fused linear1 + activation + linear2 + residual + LayerNorm.  x: (M, H)."""
    M, H = x.shape
    FF = p["w_ff1"].shape[1]
    tm = _row_tile(M)
    blocks = [((tm, H), jnp.float32, 2),
              ((H, FF), jnp.bfloat16, 1), ((1, FF), jnp.float32, 1),
              ((FF, H), jnp.bfloat16, 1), ((1, H), jnp.float32, 1),
              ((1, H), jnp.float32, 1), ((1, H), jnp.float32, 1),
              ((tm, H), jnp.float32, 2), ((tm, FF), jnp.float32, 2)]
    # TODO(synk): for very large FF on v7x (64 MiB VMEM) also tile FF itself with an
    # 'arbitrary' reduction axis + f32 accumulator for w_ff2.
    return pl.pallas_call(
        partial(_ffn_kernel, activation=activation, eps=eps),
        out_shape=jax.ShapeDtypeStruct((M, H), jnp.float32),
        grid=(pl.cdiv(M, tm),),
        in_specs=[pl.BlockSpec((tm, H), lambda i: (i, 0)),
                  pl.BlockSpec((H, FF), lambda i: (0, 0), pipeline_mode=_BUF1),
                  pl.BlockSpec((1, FF), lambda i: (0, 0), pipeline_mode=_BUF1),
                  pl.BlockSpec((FF, H), lambda i: (0, 0), pipeline_mode=_BUF1),
                  pl.BlockSpec((1, H), lambda i: (0, 0), pipeline_mode=_BUF1),
                  pl.BlockSpec((1, H), lambda i: (0, 0), pipeline_mode=_BUF1),
                  pl.BlockSpec((1, H), lambda i: (0, 0), pipeline_mode=_BUF1)],
        out_specs=pl.BlockSpec((tm, H), lambda i: (i, 0)),
        compiler_params=_mosaic_params(("parallel",), blocks),
    )(x, p["w_ff1"], p["b_ff1"].reshape(1, FF), p["w_ff2"], p["b_ff2"].reshape(1, H),
      gamma.reshape(1, H), beta.reshape(1, H))


# ----------------------------- LayerNorm / generator Linear -------------------

def _ln_kernel(x_ref, g_ref, b_ref, o_ref, *, eps):
    o_ref[...] = _layernorm(x_ref[...], g_ref[...], b_ref[...], eps)


def pallas_layernorm(x, gamma, beta, eps):
    M, H = x.shape
    tm = _row_tile(M)
    blocks = [((tm, H), jnp.float32, 2), ((1, H), jnp.float32, 1),
              ((1, H), jnp.float32, 1), ((tm, H), jnp.float32, 2)]
    return pl.pallas_call(
        partial(_ln_kernel, eps=eps),
        out_shape=jax.ShapeDtypeStruct((M, H), jnp.float32),
        grid=(pl.cdiv(M, tm),),
        in_specs=[pl.BlockSpec((tm, H), lambda i: (i, 0)),
                  pl.BlockSpec((1, H), lambda i: (0, 0), pipeline_mode=_BUF1),
                  pl.BlockSpec((1, H), lambda i: (0, 0), pipeline_mode=_BUF1)],
        out_specs=pl.BlockSpec((tm, H), lambda i: (i, 0)),
        compiler_params=_mosaic_params(("parallel",), blocks),
    )(x, gamma.reshape(1, H), beta.reshape(1, H))


def _linear_kernel(x_ref, w_ref, b_ref, o_ref):
    o_ref[...] = jnp.dot(x_ref[...].astype(jnp.bfloat16), w_ref[...],
                         preferred_element_type=jnp.float32) + b_ref[...]


def pallas_linear(x, w, b):
    """Generator head: x (M, K) f32, w (K, N) bf16, b (N,) f32 -> (M, N) f32.
    The vocab (N) axis is tiled so the weight streams through VMEM."""
    M, K = x.shape
    N = w.shape[1]
    tm = _row_tile(M)
    tn = _col_tile(N)
    blocks = [((tm, K), jnp.float32, 2), ((K, tn), jnp.bfloat16, 2),
              ((1, tn), jnp.float32, 2), ((tm, tn), jnp.float32, 2)]
    return pl.pallas_call(
        _linear_kernel,
        out_shape=jax.ShapeDtypeStruct((M, N), jnp.float32),
        grid=(pl.cdiv(M, tm), pl.cdiv(N, tn)),
        in_specs=[pl.BlockSpec((tm, K), lambda i, j: (i, 0)),
                  pl.BlockSpec((K, tn), lambda i, j: (0, j)),
                  pl.BlockSpec((1, tn), lambda i, j: (0, j))],
        out_specs=pl.BlockSpec((tm, tn), lambda i, j: (i, j)),
        compiler_params=_mosaic_params(("parallel", "parallel"), blocks),
    )(x, w, b.reshape(1, N))


# ----------------------------- model pieces -----------------------------------

def bert_embeddings(src_ids, p):
    B, S = src_ids.shape
    word = jnp.take(p["word_emb"], src_ids, axis=0)        # (B, S, H)
    pos = p["pos_emb"][:S][None]                            # (1, S, H)
    tok = p["type_emb"][0][None, None]                      # token_type_ids = 0
    emb = word + pos + tok
    H = emb.shape[-1]
    out = pallas_layernorm(emb.reshape(B * S, H), p["ln_g"], p["ln_b"], eps=1e-12)
    return out.reshape(B, S, H)


def bert_layer(x, p, src_bias, n_heads):
    """BERT encoder layer (post-LN, GELU FFN): two fused pallas_calls."""
    B, S, H = x.shape
    x1 = mha_block(x, x, p["attn"], p["ln1_g"], p["ln1_b"], 1e-12, n_heads,
                   mask=src_bias, is_self=True)
    f = ffn_block(x1.reshape(B * S, H), p, p["ln2_g"], p["ln2_b"], 1e-12, "gelu")
    return f.reshape(B, S, H)


def decoder_layer(x, memory, p, tgt_bias, n_heads):
    """nn.TransformerDecoderLayer (post-norm, ReLU FFN, dropout=identity): 3 fused calls."""
    B, St, H = x.shape
    x = mha_block(x, x, p["self_attn"], p["ln1_g"], p["ln1_b"], 1e-5, n_heads,
                  mask=tgt_bias, is_self=True)
    # memory_mask=None in the reference -> no mask add, no zeros tensor materialized
    x = mha_block(x, memory, p["cross_attn"], p["ln2_g"], p["ln2_b"], 1e-5, n_heads,
                  mask=None, is_self=False)
    f = ffn_block(x.reshape(B * St, H), p, p["ln3_g"], p["ln3_b"], 1e-5, "relu")
    return f.reshape(B, St, H)


def sinusoidal_pe(max_len, d_model):
    position = jnp.arange(max_len, dtype=jnp.float32)[:, None]
    div_term = jnp.exp(-jnp.arange(0, d_model, 2, dtype=jnp.float32)
                       * (math.log(10000.0) / d_model))
    pe = jnp.zeros((max_len, d_model), jnp.float32)
    pe = pe.at[:, 0::2].set(jnp.sin(position * div_term))
    pe = pe.at[:, 1::2].set(jnp.cos(position * div_term))
    return pe


def encoder_decoder_forward(params, src_ids, src_mask, tgt_ids, tgt_mask, n_heads):
    """Mirrors EncoderDecoderModel.forward (eval mode)."""
    # ---- encoder (synthetic BERT-style AutoModel) ----
    x = bert_embeddings(src_ids, params["encoder"]["embeddings"])
    src_bias = (1.0 - src_mask.astype(jnp.float32))[:, None, :] * -1e9   # (B, 1, Ss)
    for lp in params["encoder"]["layers"]:
        x = bert_layer(x, lp, src_bias, n_heads)
    memory = x                                              # last_hidden_state

    # ---- target embedding + sinusoidal positional encoding (dropout = identity) ----
    B, St = tgt_ids.shape
    H = memory.shape[-1]
    tgt = jnp.take(params["tgt_emb"], tgt_ids, axis=0) + params["pos_encoding"][:St][None]

    # ---- nn.TransformerDecoder (tgt_mask additive, memory_mask=None) ----
    tgt_bias = tgt_mask[None]                               # (1, St, St), shared over batch
    y = tgt
    for lp in params["decoder"]["layers"]:
        y = decoder_layer(y, memory, lp, tgt_bias, n_heads)

    # ---- generator ----
    logits = pallas_linear(y.reshape(B * St, H), params["gen_w"], params["gen_b"])
    return logits.reshape(B, St, -1)


# ----------------------------- deterministic parameter init -------------------

def init_params(key, src_vocab, tgt_vocab, hidden, ff, n_enc, n_dec,
                max_src_pos=64, max_tgt_pos=1000):
    it = iter(jax.random.split(key, 256))

    def xavier(shape):
        a = math.sqrt(6.0 / (shape[0] + shape[1]))
        return jax.random.uniform(next(it), shape, jnp.float32, -a, a)

    def xavier_bf16(shape):
        return xavier(shape).astype(jnp.bfloat16)

    def normal(shape, std=0.02):
        return jax.random.normal(next(it), shape, jnp.float32) * std

    ones = lambda: jnp.ones((hidden,), jnp.float32)
    zeros = lambda: jnp.zeros((hidden,), jnp.float32)

    def attn_params():
        # K/V projections pre-fused into one (H, 2H) weight; matmul weights stored bf16.
        return {"wq": xavier_bf16((hidden, hidden)), "bq": normal((hidden,)),
                "wkv": jnp.concatenate([xavier((hidden, hidden)),
                                        xavier((hidden, hidden))],
                                       axis=1).astype(jnp.bfloat16),
                "bkv": jnp.concatenate([normal((hidden,)), normal((hidden,))], axis=0),
                "wo": xavier_bf16((hidden, hidden)), "bo": normal((hidden,))}

    enc_layers = [{
        "attn": attn_params(),
        "ln1_g": ones(), "ln1_b": zeros(),
        "w_ff1": xavier_bf16((hidden, ff)), "b_ff1": normal((ff,)),
        "w_ff2": xavier_bf16((ff, hidden)), "b_ff2": normal((hidden,)),
        "ln2_g": ones(), "ln2_b": zeros(),
    } for _ in range(n_enc)]

    dec_layers = [{
        "self_attn": attn_params(),
        "cross_attn": attn_params(),
        "ln1_g": ones(), "ln1_b": zeros(),
        "ln2_g": ones(), "ln2_b": zeros(),
        "ln3_g": ones(), "ln3_b": zeros(),
        "w_ff1": xavier_bf16((hidden, ff)), "b_ff1": normal((ff,)),
        "w_ff2": xavier_bf16((ff, hidden)), "b_ff2": normal((hidden,)),
    } for _ in range(n_dec)]

    return {
        # TODO(synk): encoder weights are synthesized (no HF checkpoint load); the
        # frozen-param bookkeeping in __init__ does not affect the forward pass.
        "encoder": {
            "embeddings": {"word_emb": normal((src_vocab, hidden)),
                           "pos_emb": normal((max_src_pos, hidden)),
                           "type_emb": normal((2, hidden)),
                           "ln_g": ones(), "ln_b": zeros()},
            "layers": enc_layers,
        },
        "decoder": {"layers": dec_layers},
        "tgt_emb": xavier((tgt_vocab, hidden)),
        "gen_w": xavier_bf16((hidden, tgt_vocab)),
        "gen_b": normal((tgt_vocab,)),
        "pos_encoding": sinusoidal_pe(max_tgt_pos, hidden),
    }


# ----------------------------- main --------------------------------------------

if __name__ == "__main__":
    # Small but lane-friendly toy config (last dims multiples of 128 where feasible)
    # so the run is not dominated by masked partial stores / MXU starvation.
    B, S_SRC, S_TGT = 2, 16, 8
    HIDDEN, HEADS = 128, 4
    FF = 4 * HIDDEN   # TODO(synk): PyTorch default dim_feedforward=2048; scaled for toy model.
    SRC_VOCAB, TGT_VOCAB = 256, 128
    N_ENC_LAYERS, N_DEC_LAYERS = 2, 2

    root = jax.random.PRNGKey(0)
    kp, kd = jax.random.split(root)
    params = init_params(kp, SRC_VOCAB, TGT_VOCAB, HIDDEN, FF, N_ENC_LAYERS, N_DEC_LAYERS)

    k1, k2 = jax.random.split(kd)
    src_ids = jax.random.randint(k1, (B, S_SRC), 0, SRC_VOCAB)
    tgt_ids = jax.random.randint(k2, (B, S_TGT), 0, TGT_VOCAB)
    src_mask = jnp.ones((B, S_SRC), jnp.int32).at[1, -3:].set(0)   # pad last 3 of batch 1
    # causal mask (float additive, like nn.Transformer.generate_square_subsequent_mask)
    tgt_mask = jnp.where(jnp.triu(jnp.ones((S_TGT, S_TGT), bool), k=1),
                         -1e9, 0.0).astype(jnp.float32)

    logits = encoder_decoder_forward(params, src_ids, src_mask, tgt_ids, tgt_mask, HEADS)
    jax.block_until_ready(logits)

    assert logits.shape == (B, S_TGT, TGT_VOCAB), logits.shape
    assert bool(jnp.all(jnp.isfinite(logits)))
    print("KERNEL_OK")
</pallas_src>

<mosaic_0001>
module attributes {stable_mosaic.version = 11 : i64} {
  func.func @_ln_kernel(%arg0: i32, %arg1: memref<32x128xf32, #tpu.memory_space<vmem>>, %arg2: memref<1x128xf32, #tpu.memory_space<vmem>>, %arg3: memref<1x128xf32, #tpu.memory_space<vmem>>, %arg4: memref<32x128xf32, #tpu.memory_space<vmem>>) attributes {dimension_semantics = [#tpu.dimension_semantics<parallel>], iteration_bounds = array<i64: 1>, scalar_prefetch = 0 : i64, scratch_operands = 0 : i64, tpu.core_type = #tpu.core_type<tc>, window_params = [{transform_indices = @transform_0, window_bounds = array<i64: 32, 128>}, {pipeline_mode = #tpu.pipeline_mode<synchronous>, transform_indices = @transform_1, window_bounds = array<i64: 1, 128>}, {pipeline_mode = #tpu.pipeline_mode<synchronous>, transform_indices = @transform_2, window_bounds = array<i64: 1, 128>}, {transform_indices = @transform_3, window_bounds = array<i64: 32, 128>}]} {
    %c0 = arith.constant 0 : index
    %c0_0 = arith.constant 0 : index
    %0 = vector.load %arg1[%c0, %c0_0] : memref<32x128xf32, #tpu.memory_space<vmem>>, vector<32x128xf32>
    %c0_1 = arith.constant 0 : index
    %c0_2 = arith.constant 0 : index
    %1 = vector.load %arg2[%c0_1, %c0_2] : memref<1x128xf32, #tpu.memory_space<vmem>>, vector<1x128xf32>
    %c0_3 = arith.constant 0 : index
    %c0_4 = arith.constant 0 : index
    %2 = vector.load %arg3[%c0_3, %c0_4] : memref<1x128xf32, #tpu.memory_space<vmem>>, vector<1x128xf32>
    %cst = arith.constant dense<0.000000e+00> : vector<32xf32>
    %3 = vector.multi_reduction <add>, %0, %cst [1] : vector<32x128xf32> to vector<32xf32>
    %4 = vector.shape_cast %3 : vector<32xf32> to vector<32x1xf32>
    %cst_5 = arith.constant 1.280000e+02 : f32
    %5 = vector.broadcast %cst_5 : f32 to vector<32x1xf32>
    %6 = arith.divf %4, %5 : vector<32x1xf32>
    %7 = vector.broadcast %6 : vector<32x1xf32> to vector<32x128xf32>
    %8 = arith.subf %0, %7 : vector<32x128xf32>
    %9 = arith.mulf %8, %8 : vector<32x128xf32>
    %cst_6 = arith.constant dense<0.000000e+00> : vector<32xf32>
    %10 = vector.multi_reduction <add>, %9, %cst_6 [1] : vector<32x128xf32> to vector<32xf32>
    %11 = vector.shape_cast %10 : vector<32xf32> to vector<32x1xf32>
    %cst_7 = arith.constant 1.280000e+02 : f32
    %12 = vector.broadcast %cst_7 : f32 to vector<32x1xf32>
    %13 = arith.divf %11, %12 : vector<32x1xf32>
    %cst_8 = arith.constant 9.99999996E-13 : f32
    %14 = vector.broadcast %cst_8 : f32 to vector<32x1xf32>
    %15 = arith.addf %13, %14 : vector<32x1xf32>
    %16 = math.rsqrt %15 : vector<32x1xf32>
    %17 = vector.broadcast %16 : vector<32x1xf32> to vector<32x128xf32>
    %18 = arith.mulf %8, %17 : vector<32x128xf32>
    %19 = vector.broadcast %1 : vector<1x128xf32> to vector<32x128xf32>
    %20 = arith.mulf %18, %19 : vector<32x128xf32>
    %21 = vector.broadcast %2 : vector<1x128xf32> to vector<32x128xf32>
    %22 = arith.addf %20, %21 : vector<32x128xf32>
    %c0_9 = arith.constant 0 : index
    %c0_10 = arith.constant 0 : index
    %23 = vector.load %arg4[%c0_9, %c0_10] : memref<32x128xf32, #tpu.memory_space<vmem>>, vector<32x128xf32>
    tpu.vector_store %arg4[%c0_9, %c0_10], %22 {strides = array<i32>} : memref<32x128xf32, #tpu.memory_space<vmem>>, vector<32x128xf32>,
    return
  }
  func.func @transform_0(%arg0: i32) -> (i32, i32) {
    %c0_i32 = arith.constant 0 : i32
    %c0_i32_0 = arith.constant 0 : i32
    return %arg0, %c0_i32 : i32, i32
  }
  func.func @transform_1(%arg0: i32) -> (i32, i32) {
    %c0_i32 = arith.constant 0 : i32
    %c0_i32_0 = arith.constant 0 : i32
    %c0_i32_1 = arith.constant 0 : i32
    return %c0_i32, %c0_i32_0 : i32, i32
  }
  func.func @transform_2(%arg0: i32) -> (i32, i32) {
    %c0_i32 = arith.constant 0 : i32
    %c0_i32_0 = arith.constant 0 : i32
    %c0_i32_1 = arith.constant 0 : i32
    return %c0_i32, %c0_i32_0 : i32, i32
  }
  func.func @transform_3(%arg0: i32) -> (i32, i32) {
    %c0_i32 = arith.constant 0 : i32
    %c0_i32_0 = arith.constant 0 : i32
    return %arg0, %c0_i32 : i32, i32
  }
}

</mosaic_0001>

<bundles_post_ra>
// kernel: tpu_custom_call.1
= control target key start
LH: loop header
LB: loop body
LE: loop exit
PB: predicated region body
PF: predicated region fallthrough
CT: control target
= control target key end

     0   :  { %8 = vsyncpa [#allocation3], 0  ;;  %s243_s0 = inlined_call_operand.hbm [shape: f32[32,128], index: 0, kind: input, shape index: {}]   ;;  %s244_s1 = inlined_call_operand.vmem [shape: f32[1,128], index: 1, kind: input, shape index: {}]   ;;  %s245_s2 = inlined_call_operand.vmem [shape: f32[1,128], index: 2, kind: input, shape index: {}]   ;;  %s246_s3 = inlined_call_operand.hbm [shape: f32[32,128], index: 3, kind: output, shape index: {}]  }
   0x1   :  { %9 = vsyncpa [#allocation4], 0  ;;  %s183_s12 = smov [#allocation2]   ;;  %s135_s16 = scalar_lea.hbm %s243_s0, 512 }
   0x2   :  { %s15_s13 = sshll.u32 %s183_s12, 4  ;;  %p136_p0 = scmp.ne.s32.totalorder %s243_s0, %s135_s16  ;;  %s16_s13 = int_to_ptr.vmem [resolvable:$true] %s15_s13 }
   0x3   :  { %p139_p1 = scmp.lt.u32.totalorder %s135_s16, %s243_s0 }
   0x5   :  { %p141_p2 = pnand %p139_p1, %p136_p0 }
   0x7   :  { %144 = shalt.err (!%p141_p2)
}
   0x8   :  { %s145_s21 = scalar_lea.vmem %s16_s13, 512  ;;  %p150_p4 = scmp.lt.s32.totalorder %s16_s13, %s16_s13 }
   0x9   :  { %p146_p3 = scmp.ne.s32.totalorder %s16_s13, %s145_s21  ;;  %p151_p5 = scmp.lt.s32.totalorder %s145_s21, %s145_s21 }
   0xb   :  { %p152_p6 = por %p151_p5, %p150_p4 }
   0xd   :  { %p153_p7 = pnand %p152_p6, %p146_p3 }
   0xf   :  { %156 = shalt.err (!%p153_p7)
}
  0x10   :  { %s184_s22 = smov 128   ;;  %s185_s23 = smov 8  }
  0x11   :  { %21 = dma.hbm_to_vmem [thread:$0]  %s243_s0, 512, %s16_s13, [#allocation3], %s184_s22, %s184_s22, %s185_s23  }
  0x12   :  { %179 = dma.done.wait [#allocation3], 512  }
  0x13   :  { %180 = vsyncadd [#allocation3], 4294966784  ;;  %v29_v0 = vld [vmem:[#allocation2] sm:$0xff]  ;;  %v31_v1 = vld [vmem:[#allocation2 + $0x10] sm:$0xff]  ;;  %s186_s29 = smov [#allocation5]  }
  0x14   :  { %35 = vadd.xlane.f32.xlu0 %v29_v0  ;;  %39 = vadd.xlane.f32.xlu1 %v31_v1  ;;  %v30_v2 = vld [vmem:[#allocation2 + $0x8] sm:$0xff]  ;;  %v32_v3 = vld [vmem:[#allocation2 + $0x18] sm:$0xff]  ;;  %v121_v33 = vld [vmem:[%s244_s1] ss:$0 sm:$0xff]  ;;  %s109_s1 = sshll.u32 %s186_s29, 4  ;;  %s110_s1 = int_to_ptr.vmem [resolvable:$true] %s109_s1 }
  0x15   :  { %v122_v35 = vld [vmem:[%s245_s2] ss:$0 sm:$0xff]  ;;  %s157_s2 = scalar_lea.vmem %s110_s1, 512  ;;  %p162_p9 = scmp.lt.s32.totalorder %s110_s1, %s110_s1 }
  0x16   :  { %p158_p8 = scmp.ne.s32.totalorder %s110_s1, %s157_s2  ;;  %p163_p10 = scmp.lt.s32.totalorder %s157_s2, %s157_s2 }
  0x18   :  { %37 = vadd.xlane.f32.xlu0 %v30_v2  ;;  %41 = vadd.xlane.f32.xlu1 %v32_v3  ;;  %p164_p11 = por %p163_p10, %p162_p9 }
  0x1a   :  { %p165_p12 = pnand %p164_p11, %p158_p8 }
  0xa1   :  { %v36_v4 = vpop.xlane.xlu0 %35  ;;  %v40_v5 = vpop.xlane.xlu1 %39 }
  0xa2   :  { %v44_v6 = vmul.f32 0.0078125, %v36_v4  ;;  %v46_v7 = vmul.f32 0.0078125, %v40_v5 }
  0xa4   :  { %v48_v8 = vsub.f32 %v29_v0, %v44_v6  ;;  %v50_v9 = vsub.f32 %v31_v1, %v46_v7 }
  0xa5   :  { %v38_v10 = vpop.xlane.xlu0 %37  ;;  %v42_v11 = vpop.xlane.xlu1 %41 }
  0xa6   :  { %v45_v12 = vmul.f32 0.0078125, %v38_v10  ;;  %v52_v13 = vmul.f32 %v48_v8, %v48_v8  ;;  %v47_v14 = vmul.f32 0.0078125, %v42_v11  ;;  %v54_v17 = vmul.f32 %v50_v9, %v50_v9 }
  0xa8   :  { %v49_v15 = vsub.f32 %v30_v2, %v45_v12  ;;  %56 = vadd.xlane.f32.xlu0 %v52_v13  ;;  %v51_v16 = vsub.f32 %v32_v3, %v47_v14 }
  0xaa   :  { %v53_v18 = vmul.f32 %v49_v15, %v49_v15  ;;  %v55_v19 = vmul.f32 %v51_v16, %v51_v16 }
  0xac   :  { %60 = vadd.xlane.f32.xlu0 %v54_v17  ;;  %58 = vadd.xlane.f32.xlu1 %v53_v18 }
  0xb0   :  { %62 = vadd.xlane.f32.xlu1 %v55_v19 }
 0x135   :  { %v57_v20 = vpop.xlane.xlu0 %56 }
 0x136   :  { %v64_v21 = vmul.f32 0.0078125, %v57_v20 }
 0x138   :  { %v68_v22 = vadd.f32 1e-12, %v64_v21 }
 0x139   :  { %v59_v23 = vpop.xlane.xlu1 %58  ;;  %v61_v24 = vpop.xlane.xlu0 %60 }
 0x13a   :  { %127 = vrsqrt.f32 %v68_v22  ;;  %v65_v25 = vmul.f32 0.0078125, %v59_v23  ;;  %v66_v26 = vmul.f32 0.0078125, %v61_v24 }
 0x13c   :  { %v69_v27 = vadd.f32 1e-12, %v65_v25  ;;  %v70_v28 = vadd.f32 1e-12, %v66_v26 }
 0x13d   :  { %v63_v29 = vpop.xlane.xlu1 %62 }
 0x13e   :  { %129 = vrsqrt.f32 %v69_v27  ;;  %v67_v30 = vmul.f32 0.0078125, %v63_v29 }
 0x13f   :  { %131 = vrsqrt.f32 %v70_v28 }
 0x140   :  { %v71_v31 = vadd.f32 1e-12, %v67_v30 }
 0x142   :  { %133 = vrsqrt.f32 %v71_v31 }
 0x144   :  { %v128_v32 = vpop.eup %127 }
 0x145   :  { %v76_v34 = vmul.f32 %v128_v32, %v48_v8 }
 0x147   :  { %v86_v36 = vmul.f32 %v121_v33, %v76_v34 }
 0x148   :  { %v130_v37 = vpop.eup %129 }
 0x149   :  { %v132_v38 = vpop.eup %131  ;;  %v77_v39 = vmul.f32 %v130_v37, %v49_v15  ;;  %v96_v40 = vadd.f32 %v122_v35, %v86_v36 }
 0x14a   :  { %v78_v41 = vmul.f32 %v132_v38, %v50_v9 }
 0x14b   :  { %v87_v42 = vmul.f32 %v121_v33, %v77_v39  ;;  %100 = vst [vmem:[#allocation5] sm:$0xff] %v96_v40 }
 0x14c   :  { %v134_v43 = vpop.eup %133  ;;  %v88_v44 = vmul.f32 %v121_v33, %v78_v41 }
 0x14d   :  { %v79_v45 = vmul.f32 %v134_v43, %v51_v16  ;;  %v97_v46 = vadd.f32 %v122_v35, %v87_v42 }
 0x14e   :  { %v98_v47 = vadd.f32 %v122_v35, %v88_v44 }
 0x14f   :  { %v89_v48 = vmul.f32 %v121_v33, %v79_v45  ;;  %101 = vst [vmem:[#allocation5 + $0x8] sm:$0xff] %v97_v46 }
 0x150   :  { %102 = vst [vmem:[#allocation5 + $0x10] sm:$0xff] %v98_v47 }
 0x151   :  { %v99_v49 = vadd.f32 %v122_v35, %v89_v48 }
 0x153   :  { %103 = vst [vmem:[#allocation5 + $0x18] sm:$0xff] %v99_v49 }
 0x154   :  { %168 = shalt.err (!%p165_p12)
}
 0x155   :  { %s169_s5 = scalar_lea.hbm %s246_s3, 512 }
 0x156   :  { %p170_p13 = scmp.ne.s32.totalorder %s246_s3, %s169_s5  ;;  %p173_p0 = scmp.lt.u32.totalorder %s169_s5, %s246_s3 }
 0x158   :  { %p175_p1 = pnand %p173_p0, %p170_p13 }
 0x15a   :  { %178 = shalt.err (!%p175_p1)
}
 0x15b   :  { %115 = dma.vmem_to_hbm [thread:$0]  %s110_s1, 512, %s246_s3, [#allocation4], %s184_s22, %s184_s22, %s185_s23  }
 0x15c   :  { %181 = dma.done.wait [#allocation4], 512  }
 0x15d   :  { %182 = vsyncadd [#allocation4], 4294966784 }
 0x15e   :  { %119 = vsyncpa [#allocation3], 1 }
 0x15f   :  { %120 = vsyncpa [#allocation4], 1 }

</bundles_post_ra>
